<compile_context>
chip_gen: v7x
topology: tpu7x:2x2x1
jax: 0.10.0
libtpu: 0.0.40
codegen_flags: <defaults>
</compile_context>

<pallas_src>
import math

import jax
import jax.numpy as jnp
from jax.experimental import pallas as pl
from jax.experimental.pallas import tpu as pltpu

NHEAD = 8
EPS = 1e-5
NEG_INF = -1e9

# Weight / inter-kernel activation storage dtype (MXU input dtype).
# Set to jnp.bfloat16 on v6e / v7x: halves HBM traffic, doubles MXU rate.
COMPUTE_DTYPE = jnp.float32

# Scoped-VMEM ceiling: above the 16/32 MiB defaults (v5e/v6e) so large tiles fit,
# below v7x's 64 MiB physical per-TensorCore.
VMEM_LIMIT = 48 * 1024 * 1024


def _sublane_align():
    # bf16 packs 2 rows per sublane -> 16-row tiles; f32 -> 8.
    return 16 if COMPUTE_DTYPE == jnp.bfloat16 else 8


def _pick_tile(dim, target, align):
    """Largest tile <= target that is a multiple of `align` and divides `dim`,
    falling back to the full dim (full-dim blocks are always legal)."""
    if dim <= target:
        return dim
    t = (target // align) * align
    while t >= align:
        if dim % t == 0:
            return t
        t -= align
    return dim


# ----------------------------- Pallas kernels -----------------------------

def _linear_kernel(x_ref, w_ref, b_ref, o_ref, acc_ref):
    # grid = (M/tm, N/tn, K/tk); K is the (arbitrary) reduction axis.
    @pl.when(pl.program_id(2) == 0)
    def _():
        acc_ref[...] = jnp.zeros_like(acc_ref)

    acc_ref[...] += jnp.dot(x_ref[...], w_ref[...],
                            preferred_element_type=jnp.float32)

    @pl.when(pl.program_id(2) == pl.num_programs(2) - 1)
    def _():
        o_ref[...] = (acc_ref[...] + b_ref[...]).astype(o_ref.dtype)


def pallas_linear(x, w, b, out_dtype=None):
    # x: (M, K)  w: (K, N)  b: (N,) f32
    M, K = x.shape
    N = w.shape[1]
    out_dtype = COMPUTE_DTYPE if out_dtype is None else out_dtype
    tm = _pick_tile(M, 512, _sublane_align())
    tn = _pick_tile(N, 1024, 128)   # lane-dense N tiles (shrink targets on v7x bf16 if needed)
    tk = _pick_tile(K, 512, 128)
    return pl.pallas_call(
        _linear_kernel,
        out_shape=jax.ShapeDtypeStruct((M, N), out_dtype),
        grid=(M // tm, N // tn, K // tk),
        in_specs=[
            pl.BlockSpec((tm, tk), lambda i, j, k: (i, k)),
            pl.BlockSpec((tk, tn), lambda i, j, k: (k, j)),
            pl.BlockSpec((1, tn), lambda i, j, k: (0, j)),
        ],
        out_specs=pl.BlockSpec((tm, tn), lambda i, j, k: (i, j)),
        scratch_shapes=[pltpu.VMEM((tm, tn), jnp.float32)],
        compiler_params=pltpu.CompilerParams(
            dimension_semantics=("parallel", "parallel", "arbitrary"),
            vmem_limit_bytes=VMEM_LIMIT),
    )(x, w, b.reshape(1, N))


def _linear_add_ln_kernel(x_ref, w_ref, b_ref, r_ref, g_ref, beta_ref, o_ref, acc_ref):
    # out = LayerNorm(r + x @ W + b); grid = (M/tm, K/tk), N (=E) kept resident.
    @pl.when(pl.program_id(1) == 0)
    def _():
        acc_ref[...] = jnp.zeros_like(acc_ref)

    acc_ref[...] += jnp.dot(x_ref[...], w_ref[...],
                            preferred_element_type=jnp.float32)

    @pl.when(pl.program_id(1) == pl.num_programs(1) - 1)
    def _():
        y = acc_ref[...] + b_ref[...] + r_ref[...].astype(jnp.float32)
        mu = jnp.mean(y, axis=-1, keepdims=True)
        var = jnp.mean((y - mu) ** 2, axis=-1, keepdims=True)
        o_ref[...] = ((y - mu) * jax.lax.rsqrt(var + EPS) * g_ref[...]
                      + beta_ref[...]).astype(o_ref.dtype)


def pallas_linear_add_ln(x, w, b, res, g, beta):
    M, K = x.shape
    N = w.shape[1]
    tm = _pick_tile(M, 512, _sublane_align())
    tk = _pick_tile(K, 512, 128)
    return pl.pallas_call(
        _linear_add_ln_kernel,
        out_shape=jax.ShapeDtypeStruct((M, N), COMPUTE_DTYPE),
        grid=(M // tm, K // tk),
        in_specs=[
            pl.BlockSpec((tm, tk), lambda i, k: (i, k)),
            pl.BlockSpec((tk, N), lambda i, k: (k, 0)),
            pl.BlockSpec((1, N), lambda i, k: (0, 0)),
            pl.BlockSpec((tm, N), lambda i, k: (i, 0)),   # residual (fetched once per i)
            pl.BlockSpec((1, N), lambda i, k: (0, 0)),
            pl.BlockSpec((1, N), lambda i, k: (0, 0)),
        ],
        out_specs=pl.BlockSpec((tm, N), lambda i, k: (i, 0)),
        scratch_shapes=[pltpu.VMEM((tm, N), jnp.float32)],
        compiler_params=pltpu.CompilerParams(
            dimension_semantics=("parallel", "arbitrary"),
            vmem_limit_bytes=VMEM_LIMIT),
    )(x, w, b.reshape(1, N), res, g.reshape(1, N), beta.reshape(1, N))


def _ffn_kernel(x_ref, w1_ref, b1_ref, w2_ref, b2_ref, g_ref, beta_ref, o_ref, acc_ref):
    # out = LayerNorm(x + relu(x@W1+b1)@W2 + b2); grid = (M/tm, F/tf).
    # The (tm, tf) hidden chunk lives only in VMEM/registers -> no HBM round trip.
    @pl.when(pl.program_id(1) == 0)
    def _():
        acc_ref[...] = jnp.zeros_like(acc_ref)

    h = jnp.dot(x_ref[...], w1_ref[...], preferred_element_type=jnp.float32) + b1_ref[...]
    h = jnp.maximum(h, 0.0)
    acc_ref[...] += jnp.dot(h.astype(w2_ref.dtype), w2_ref[...],
                            preferred_element_type=jnp.float32)

    @pl.when(pl.program_id(1) == pl.num_programs(1) - 1)
    def _():
        y = acc_ref[...] + b2_ref[...] + x_ref[...].astype(jnp.float32)   # x is the residual too
        mu = jnp.mean(y, axis=-1, keepdims=True)
        var = jnp.mean((y - mu) ** 2, axis=-1, keepdims=True)
        o_ref[...] = ((y - mu) * jax.lax.rsqrt(var + EPS) * g_ref[...]
                      + beta_ref[...]).astype(o_ref.dtype)


def pallas_ffn(x, w1, b1, w2, b2, g, beta):
    M, E = x.shape
    F = w1.shape[1]
    tm = _pick_tile(M, 256, _sublane_align())
    tf = _pick_tile(F, 512, 128)
    return pl.pallas_call(
        _ffn_kernel,
        out_shape=jax.ShapeDtypeStruct((M, E), COMPUTE_DTYPE),
        grid=(M // tm, F // tf),
        in_specs=[
            pl.BlockSpec((tm, E), lambda i, f: (i, 0)),    # x: matmul input AND residual
            pl.BlockSpec((E, tf), lambda i, f: (0, f)),
            pl.BlockSpec((1, tf), lambda i, f: (0, f)),
            pl.BlockSpec((tf, E), lambda i, f: (f, 0)),
            pl.BlockSpec((1, E), lambda i, f: (0, 0)),
            pl.BlockSpec((1, E), lambda i, f: (0, 0)),
            pl.BlockSpec((1, E), lambda i, f: (0, 0)),
        ],
        out_specs=pl.BlockSpec((tm, E), lambda i, f: (i, 0)),
        scratch_shapes=[pltpu.VMEM((tm, E), jnp.float32)],
        compiler_params=pltpu.CompilerParams(
            dimension_semantics=("parallel", "arbitrary"),
            vmem_limit_bytes=VMEM_LIMIT),
    )(x, w1, b1.reshape(1, F), w2, b2.reshape(1, E), g.reshape(1, E), beta.reshape(1, E))


def _flash_attn_kernel(q_ref, kt_ref, v_ref, am_ref, kpm_ref, o_ref,
                       m_sc, l_sc, acc_sc):
    # grid = (B, Lq/tq, Lk/tk); online softmax over the k-tile (arbitrary) axis.
    ki = pl.program_id(2)

    @pl.when(ki == 0)
    def _():
        m_sc[...] = jnp.full(m_sc.shape, -jnp.inf, jnp.float32)
        l_sc[...] = jnp.zeros_like(l_sc)
        acc_sc[...] = jnp.zeros_like(acc_sc)

    q = q_ref[0]     # (H, tq, Dh) -- 1/sqrt(Dh) already folded into Wq/bq
    kt = kt_ref[0]   # (H, Dh, tk) -- K pre-transposed: no in-kernel XLU transpose
    v = v_ref[0]     # (H, tk, Dh)

    s = jnp.einsum("hqd,hdk->hqk", q, kt, preferred_element_type=jnp.float32)
    # shared (tq, tk) attention bias + (1, 1, tk) key-padding bias, broadcast over heads
    s = s + am_ref[...][None, :, :] + kpm_ref[...]

    m_prev = m_sc[...]
    m_new = jnp.maximum(m_prev, jnp.max(s, axis=-1, keepdims=True))
    alpha = jnp.exp(m_prev - m_new)
    p = jnp.exp(s - m_new)
    l_sc[...] = alpha * l_sc[...] + jnp.sum(p, axis=-1, keepdims=True)
    acc_sc[...] = alpha * acc_sc[...] + jnp.einsum(
        "hqk,hkd->hqd", p.astype(v.dtype), v, preferred_element_type=jnp.float32)
    m_sc[...] = m_new

    @pl.when(ki == pl.num_programs(2) - 1)
    def _():
        inv_l = pl.reciprocal(l_sc[...], approx=False)   # exact; EUP slot, off the VALU path
        out = acc_sc[...] * inv_l                        # (H, tq, Dh)
        nh, _, dh = out.shape
        # lane-dense (tq, H*Dh = E) output block: unmasked full-lane HBM writeback
        for h in range(nh):
            o_ref[0, :, h * dh:(h + 1) * dh] = out[h].astype(o_ref.dtype)


def pallas_flash_attention(q, kt, v, attn_bias, kpm_bias):
    # q: (B, H, Lq, Dh)  kt: (B, H, Dh, Lk)  v: (B, H, Lk, Dh)
    # attn_bias: (Lq, Lk) additive f32 (shared over batch & heads)
    # kpm_bias:  (B, 1, Lk) additive f32 key-padding bias
    B, H, Lq, Dh = q.shape
    Lk = v.shape[2]
    E = H * Dh
    tq = _pick_tile(Lq, 256, _sublane_align())
    tk = _pick_tile(Lk, 512, 128)
    return pl.pallas_call(
        _flash_attn_kernel,
        out_shape=jax.ShapeDtypeStruct((B, Lq, E), COMPUTE_DTYPE),
        grid=(B, Lq // tq, Lk // tk),
        in_specs=[
            pl.BlockSpec((1, H, tq, Dh), lambda b, qi, ki: (b, 0, qi, 0)),
            pl.BlockSpec((1, H, Dh, tk), lambda b, qi, ki: (b, 0, 0, ki)),
            pl.BlockSpec((1, H, tk, Dh), lambda b, qi, ki: (b, 0, ki, 0)),
            pl.BlockSpec((tq, tk), lambda b, qi, ki: (qi, ki)),
            pl.BlockSpec((1, 1, tk), lambda b, qi, ki: (b, 0, ki)),
        ],
        out_specs=pl.BlockSpec((1, tq, E), lambda b, qi, ki: (b, qi, 0)),
        scratch_shapes=[
            pltpu.VMEM((H, tq, 1), jnp.float32),    # running max
            pltpu.VMEM((H, tq, 1), jnp.float32),    # running denominator
            pltpu.VMEM((H, tq, Dh), jnp.float32),   # running numerator
        ],
        compiler_params=pltpu.CompilerParams(
            dimension_semantics=("parallel", "parallel", "arbitrary"),
            vmem_limit_bytes=VMEM_LIMIT),
    )(q, kt, v, attn_bias, kpm_bias)


# --------------------------- pure-JAX reference ops ---------------------------

def ref_linear(x, w, b, out_dtype=None):
    out_dtype = COMPUTE_DTYPE if out_dtype is None else out_dtype
    y = x.astype(jnp.float32) @ w.astype(jnp.float32) + b
    return y.astype(out_dtype)


def ref_linear_add_ln(x, w, b, res, g, beta):
    y = x.astype(jnp.float32) @ w.astype(jnp.float32) + b + res.astype(jnp.float32)
    mu = jnp.mean(y, -1, keepdims=True)
    var = jnp.mean((y - mu) ** 2, -1, keepdims=True)
    return ((y - mu) * jax.lax.rsqrt(var + EPS) * g + beta).astype(COMPUTE_DTYPE)


def ref_ffn(x, w1, b1, w2, b2, g, beta):
    xf = x.astype(jnp.float32)
    h = jnp.maximum(xf @ w1.astype(jnp.float32) + b1, 0.0)
    y = h @ w2.astype(jnp.float32) + b2 + xf
    mu = jnp.mean(y, -1, keepdims=True)
    var = jnp.mean((y - mu) ** 2, -1, keepdims=True)
    return ((y - mu) * jax.lax.rsqrt(var + EPS) * g + beta).astype(COMPUTE_DTYPE)


def ref_attention(q, kt, v, attn_bias, kpm_bias):
    s = jnp.einsum("bhqd,bhdk->bhqk", q.astype(jnp.float32), kt.astype(jnp.float32))
    s = s + attn_bias[None, None, :, :] + kpm_bias[:, :, None, :]
    p = jax.nn.softmax(s, axis=-1)
    o = jnp.einsum("bhqk,bhkd->bhqd", p, v.astype(jnp.float32))
    B, H, Lq, Dh = q.shape
    return o.transpose(0, 2, 1, 3).reshape(B, Lq, H * Dh).astype(COMPUTE_DTYPE)


PALLAS_OPS = dict(lin=pallas_linear, lin_add_ln=pallas_linear_add_ln,
                  ffn=pallas_ffn, attn=pallas_flash_attention)
REF_OPS = dict(lin=ref_linear, lin_add_ln=ref_linear_add_ln,
               ffn=ref_ffn, attn=ref_attention)


# ----------------------------- model pieces -----------------------------

def positional_encoding_table(maxlen, emb_size):
    den = jnp.exp(-jnp.arange(0, emb_size, 2, dtype=jnp.float32) * math.log(10000.0) / emb_size)
    pos = jnp.arange(0, maxlen, dtype=jnp.float32).reshape(maxlen, 1)
    pe = jnp.zeros((maxlen, emb_size), jnp.float32)
    pe = pe.at[:, 0::2].set(jnp.sin(pos * den))
    pe = pe.at[:, 1::2].set(jnp.cos(pos * den))
    return pe  # (maxlen, emb)


def multi_head_attention(p, query, kv_src, attn_bias, kpm_bias, ops, is_self):
    # query: (B, Lq, E), kv_src: (B, Lk, E). Returns concatenated head outputs
    # (B*Lq, E); the output projection is fused with residual+LayerNorm by the caller.
    B, Lq, E = query.shape
    Lk = kv_src.shape[1]
    H, Dh = NHEAD, E // NHEAD
    lin = ops["lin"]

    if is_self:
        qkv = lin(query.reshape(B * Lq, E), p["w_qkv"], p["b_qkv"])   # one fused matmul
        q, k, v = qkv[:, :E], qkv[:, E:2 * E], qkv[:, 2 * E:]
    else:
        q = lin(query.reshape(B * Lq, E), p["wq"], p["bq"])
        kv = lin(kv_src.reshape(B * Lk, E), p["w_kv"], p["b_kv"])     # fused KV matmul
        k, v = kv[:, :E], kv[:, E:]

    q = q.reshape(B, Lq, H, Dh).transpose(0, 2, 1, 3)    # (B, H, Lq, Dh)
    kt = k.reshape(B, Lk, H, Dh).transpose(0, 2, 3, 1)   # (B, H, Dh, Lk): K transposed once here
    v = v.reshape(B, Lk, H, Dh).transpose(0, 2, 1, 3)    # (B, H, Lk, Dh)
    # TODO(synk): the head-split transposes still run as XLA ops; emitting the QKV
    # projection directly in (B, H, L, Dh) layout needs a (batch, seq)-aware out index_map.

    o = ops["attn"](q, kt, v, attn_bias, kpm_bias)       # (B, Lq, E) lane-dense
    return o.reshape(B * Lq, E)


def encoder_layer(p, x, attn_bias, kpm_bias, ops):
    B, S, E = x.shape
    sa = p["self_attn"]
    a = multi_head_attention(sa, x, x, attn_bias, kpm_bias, ops, is_self=True)
    x1 = ops["lin_add_ln"](a, sa["wo"], sa["bo"], x.reshape(B * S, E),
                           p["ln1_g"], p["ln1_b"])                      # norm1(x + out_proj(a))
    x2 = ops["ffn"](x1, p["w1"], p["b1"], p["w2"], p["b2"], p["ln2_g"], p["ln2_b"])
    return x2.reshape(B, S, E)


def decoder_layer(p, x, memory, tgt_bias, tgt_kpm, mem_bias, mem_kpm, ops):
    B, T, E = x.shape
    sa, ca = p["self_attn"], p["cross_attn"]
    a = multi_head_attention(sa, x, x, tgt_bias, tgt_kpm, ops, is_self=True)
    x1 = ops["lin_add_ln"](a, sa["wo"], sa["bo"], x.reshape(B * T, E),
                           p["ln1_g"], p["ln1_b"])
    c = multi_head_attention(ca, x1.reshape(B, T, E), memory, mem_bias, mem_kpm,
                             ops, is_self=False)
    x2 = ops["lin_add_ln"](c, ca["wo"], ca["bo"], x1, p["ln2_g"], p["ln2_b"])
    x3 = ops["ffn"](x2, p["w1"], p["b1"], p["w2"], p["b2"], p["ln3_g"], p["ln3_b"])
    return x3.reshape(B, T, E)


def seq2seq_transformer_forward(params, src, trg, src_mask, tgt_mask,
                                src_padding_mask, tgt_padding_mask,
                                memory_key_padding_mask, ops):
    E = params["emb_size"]
    S, B = src.shape
    T = trg.shape[0]

    pe = positional_encoding_table(max(S, T) + 8, E)
    # batch-major (B, L, E) internally; the embedding gather does the (L,B)->(B,L)
    # transpose for free and the lane-dense attention output keeps it that way.
    src_x = (params["src_emb"][src.T].astype(jnp.float32) * math.sqrt(E)
             + pe[None, :S, :]).astype(COMPUTE_DTYPE)                    # (B, S, E)
    tgt_x = (params["tgt_emb"][trg.T].astype(jnp.float32) * math.sqrt(E)
             + pe[None, :T, :]).astype(COMPUTE_DTYPE)                    # (B, T, E)

    # additive masks: (Lq, Lk) bias shared over batch+heads and a (B,1,Lk) key-padding
    # bias -- never a dense (B, Lq, Lk) or per-head replicated tensor in HBM.
    src_bias = src_mask.astype(jnp.float32)                              # (S, S)
    tgt_bias = tgt_mask.astype(jnp.float32)                              # (T, T)
    mem_bias = jnp.zeros((T, S), jnp.float32)                            # memory_mask=None
    src_kpm = jnp.where(src_padding_mask, NEG_INF, 0.0).astype(jnp.float32)[:, None, :]
    tgt_kpm = jnp.where(tgt_padding_mask, NEG_INF, 0.0).astype(jnp.float32)[:, None, :]
    mem_kpm = jnp.where(memory_key_padding_mask, NEG_INF, 0.0).astype(jnp.float32)[:, None, :]

    memory = src_x
    for lp in params["enc"]:
        memory = encoder_layer(lp, memory, src_bias, src_kpm, ops)

    out = tgt_x
    for lp in params["dec"]:
        out = decoder_layer(lp, out, memory, tgt_bias, tgt_kpm, mem_bias, mem_kpm, ops)

    logits = ops["lin"](out.reshape(B * T, E), params["gen_w"], params["gen_b"],
                        out_dtype=jnp.float32)                           # (B*T, V_pad)
    V = params["tgt_vocab"]
    logits = logits.reshape(B, T, -1)[:, :, :V]
    return logits.transpose(1, 0, 2)                                     # (T, B, V) like PyTorch


# ----------------------------- parameters -----------------------------

def init_params(key, num_enc, num_dec, emb, src_vocab, tgt_vocab, ffn):
    keys = iter(jax.random.split(key, 4096))

    def dense(shape, scale=0.05):
        return jax.random.normal(next(keys), shape, jnp.float32) * scale

    def mha_params():
        return dict(wq=dense((emb, emb)), bq=dense((emb,), 0.02),
                    wk=dense((emb, emb)), bk=dense((emb,), 0.02),
                    wv=dense((emb, emb)), bv=dense((emb,), 0.02),
                    wo=dense((emb, emb)), bo=dense((emb,), 0.02))

    def enc_layer_params():
        return dict(self_attn=mha_params(),
                    w1=dense((emb, ffn)), b1=dense((ffn,), 0.02),
                    w2=dense((ffn, emb)), b2=dense((emb,), 0.02),
                    ln1_g=jnp.ones(emb, jnp.float32), ln1_b=jnp.zeros(emb, jnp.float32),
                    ln2_g=jnp.ones(emb, jnp.float32), ln2_b=jnp.zeros(emb, jnp.float32))

    def dec_layer_params():
        d = enc_layer_params()
        d["cross_attn"] = mha_params()
        d["ln3_g"] = jnp.ones(emb, jnp.float32)
        d["ln3_b"] = jnp.zeros(emb, jnp.float32)
        return d

    return dict(
        src_emb=dense((src_vocab, emb), 1.0),
        tgt_emb=dense((tgt_vocab, emb), 1.0),
        enc=[enc_layer_params() for _ in range(num_enc)],
        dec=[dec_layer_params() for _ in range(num_dec)],
        gen_w=dense((emb, tgt_vocab)),
        gen_b=dense((tgt_vocab,), 0.02),
    )


def prepare_params(raw):
    """One-time parameter prep (done once, NOT per forward call):
       * fuse QKV / KV projection weights into single matmuls
       * fold 1/sqrt(Dh) into the Q projection weights & bias
       * pad the generator to a lane-aligned (multiple-of-128) vocab
       * cast matmul weights / embeddings to COMPUTE_DTYPE (biases & LN params stay f32)
    """
    E = raw["gen_w"].shape[0]
    Dh = E // NHEAD
    scale = 1.0 / math.sqrt(Dh)
    cd = COMPUTE_DTYPE
    f32 = jnp.float32

    def prep_mha(p, fuse_qkv):
        wq = (p["wq"] * scale).astype(cd)
        bq = (p["bq"] * scale).astype(f32)
        out = dict(wo=p["wo"].astype(cd), bo=p["bo"].astype(f32))
        if fuse_qkv:
            out["w_qkv"] = jnp.concatenate([wq, p["wk"].astype(cd), p["wv"].astype(cd)], axis=1)
            out["b_qkv"] = jnp.concatenate([bq, p["bk"], p["bv"]], axis=0).astype(f32)
        else:
            out["wq"], out["bq"] = wq, bq
            out["w_kv"] = jnp.concatenate([p["wk"].astype(cd), p["wv"].astype(cd)], axis=1)
            out["b_kv"] = jnp.concatenate([p["bk"], p["bv"]], axis=0).astype(f32)
        return out

    def prep_enc(p):
        return dict(self_attn=prep_mha(p["self_attn"], True),
                    w1=p["w1"].astype(cd), b1=p["b1"].astype(f32),
                    w2=p["w2"].astype(cd), b2=p["b2"].astype(f32),
                    ln1_g=p["ln1_g"].astype(f32), ln1_b=p["ln1_b"].astype(f32),
                    ln2_g=p["ln2_g"].astype(f32), ln2_b=p["ln2_b"].astype(f32))

    def prep_dec(p):
        d = prep_enc(p)
        d["cross_attn"] = prep_mha(p["cross_attn"], False)
        d["ln3_g"], d["ln3_b"] = p["ln3_g"].astype(f32), p["ln3_b"].astype(f32)
        return d

    V = raw["gen_w"].shape[1]
    v_pad = ((V + 127) // 128) * 128
    gen_w = jnp.pad(raw["gen_w"], ((0, 0), (0, v_pad - V))).astype(cd)
    gen_b = jnp.pad(raw["gen_b"], (0, v_pad - V)).astype(f32)

    return dict(
        src_emb=raw["src_emb"].astype(cd),
        tgt_emb=raw["tgt_emb"].astype(cd),
        enc=[prep_enc(p) for p in raw["enc"]],
        dec=[prep_dec(p) for p in raw["dec"]],
        gen_w=gen_w, gen_b=gen_b,
        emb_size=E, tgt_vocab=V,
    )


# ----------------------------- main -----------------------------

if __name__ == "__main__":
    NUM_ENC, NUM_DEC = 2, 2
    EMB = 32                        # divisible by NHEAD=8 -> head_dim=4
    FFN = 64
    SRC_VOCAB, TGT_VOCAB = 100, 120
    S, T, B = 8, 6, 2

    root = jax.random.PRNGKey(0)
    k_par, k_src, k_trg = jax.random.split(root, 3)
    raw_params = init_params(k_par, NUM_ENC, NUM_DEC, EMB, SRC_VOCAB, TGT_VOCAB, FFN)
    params = prepare_params(raw_params)

    src = jax.random.randint(k_src, (S, B), 0, SRC_VOCAB, dtype=jnp.int32)
    trg = jax.random.randint(k_trg, (T, B), 0, TGT_VOCAB, dtype=jnp.int32)

    # masks (PyTorch conventions): float additive attn masks, bool key-padding masks
    src_mask = jnp.zeros((S, S), jnp.float32)
    rows = jnp.arange(T)[:, None]
    cols = jnp.arange(T)[None, :]
    tgt_mask = jnp.where(cols > rows, NEG_INF, 0.0).astype(jnp.float32)   # causal
    src_padding_mask = jnp.zeros((B, S), bool).at[1, S - 1].set(True)
    tgt_padding_mask = jnp.zeros((B, T), bool).at[1, T - 1].set(True)
    memory_key_padding_mask = src_padding_mask

    out = seq2seq_transformer_forward(
        params, src, trg, src_mask, tgt_mask,
        src_padding_mask, tgt_padding_mask, memory_key_padding_mask, PALLAS_OPS)
    out = jax.block_until_ready(out)

    ref = seq2seq_transformer_forward(
        params, src, trg, src_mask, tgt_mask,
        src_padding_mask, tgt_padding_mask, memory_key_padding_mask, REF_OPS)
    ref = jax.block_until_ready(ref)

    assert out.shape == (T, B, TGT_VOCAB), out.shape
    assert jnp.allclose(out, ref, rtol=2e-3, atol=2e-3), float(jnp.max(jnp.abs(out - ref)))
    print("KERNEL_OK")
</pallas_src>

<mosaic_0001>
module attributes {stable_mosaic.version = 11 : i64} {
  func.func @_linear_kernel(%arg0: i32, %arg1: i32, %arg2: i32, %arg3: memref<16x32xf32, #tpu.memory_space<vmem>>, %arg4: memref<32x96xf32, #tpu.memory_space<vmem>>, %arg5: memref<1x96xf32, #tpu.memory_space<vmem>>, %arg6: memref<16x96xf32, #tpu.memory_space<vmem>>, %arg7: memref<16x96xf32, #tpu.memory_space<vmem>>) attributes {dimension_semantics = [#tpu.dimension_semantics<parallel>, #tpu.dimension_semantics<parallel>, #tpu.dimension_semantics<arbitrary>], iteration_bounds = array<i64: 1, 1, 1>, scalar_prefetch = 0 : i64, scratch_operands = 1 : i64, tpu.core_type = #tpu.core_type<tc>, window_params = [{transform_indices = @transform_0, window_bounds = array<i64: 16, 32>}, {transform_indices = @transform_1, window_bounds = array<i64: 32, 96>}, {transform_indices = @transform_2, window_bounds = array<i64: 1, 96>}, {transform_indices = @transform_3, window_bounds = array<i64: 16, 96>}]} {
    %c0_i32 = arith.constant 0 : i32
    %0 = arith.cmpi eq, %arg2, %c0_i32 : i32
    %1 = arith.extui %0 : i1 to i32
    %c0_i32_0 = arith.constant 0 : i32
    %2 = arith.cmpi ne, %1, %c0_i32_0 : i32
    scf.if %2 {
      %cst_10 = arith.constant 0.000000e+00 : f32
      %12 = vector.broadcast %cst_10 : f32 to vector<16x96xf32>
      %c0_11 = arith.constant 0 : index
      %c0_12 = arith.constant 0 : index
      %13 = vector.load %arg7[%c0_11, %c0_12] : memref<16x96xf32, #tpu.memory_space<vmem>>, vector<16x96xf32>
      tpu.vector_store %arg7[%c0_11, %c0_12], %12 {strides = array<i32>} : memref<16x96xf32, #tpu.memory_space<vmem>>, vector<16x96xf32>,
    } else {
    }
    %c0 = arith.constant 0 : index
    %c0_1 = arith.constant 0 : index
    %3 = vector.load %arg7[%c0, %c0_1] : memref<16x96xf32, #tpu.memory_space<vmem>>, vector<16x96xf32>
    %c0_2 = arith.constant 0 : index
    %c0_3 = arith.constant 0 : index
    %4 = vector.load %arg3[%c0_2, %c0_3] : memref<16x32xf32, #tpu.memory_space<vmem>>, vector<16x32xf32>
    %c0_4 = arith.constant 0 : index
    %c0_5 = arith.constant 0 : index
    %5 = vector.load %arg4[%c0_4, %c0_5] : memref<32x96xf32, #tpu.memory_space<vmem>>, vector<32x96xf32>
    %cst = arith.constant dense<0.000000e+00> : vector<16x96xf32>
    %6 = tpu.matmul %4, %5, %cst {dimension_numbers = #tpu.dot_dimension_numbers<[1], [0], [0], [1], [0, 0, 1, 1], [], []>} : vector<16x32xf32>, vector<32x96xf32>, vector<16x96xf32> -> vector<16x96xf32>
    %7 = arith.addf %3, %6 : vector<16x96xf32>
    %c0_6 = arith.constant 0 : index
    %c0_7 = arith.constant 0 : index
    %8 = vector.load %arg7[%c0_6, %c0_7] : memref<16x96xf32, #tpu.memory_space<vmem>>, vector<16x96xf32>
    tpu.vector_store %arg7[%c0_6, %c0_7], %7 {strides = array<i32>} : memref<16x96xf32, #tpu.memory_space<vmem>>, vector<16x96xf32>,
    %c0_i32_8 = arith.constant 0 : i32
    %9 = arith.cmpi eq, %arg2, %c0_i32_8 : i32
    %10 = arith.extui %9 : i1 to i32
    %c0_i32_9 = arith.constant 0 : i32
    %11 = arith.cmpi ne, %10, %c0_i32_9 : i32
    scf.if %11 {
      %c0_10 = arith.constant 0 : index
      %c0_11 = arith.constant 0 : index
      %12 = vector.load %arg7[%c0_10, %c0_11] : memref<16x96xf32, #tpu.memory_space<vmem>>, vector<16x96xf32>
      %c0_12 = arith.constant 0 : index
      %c0_13 = arith.constant 0 : index
      %13 = vector.load %arg5[%c0_12, %c0_13] : memref<1x96xf32, #tpu.memory_space<vmem>>, vector<1x96xf32>
      %14 = vector.broadcast %13 : vector<1x96xf32> to vector<16x96xf32>
      %15 = arith.addf %12, %14 : vector<16x96xf32>
      %c0_14 = arith.constant 0 : index
      %c0_15 = arith.constant 0 : index
      %16 = vector.load %arg6[%c0_14, %c0_15] : memref<16x96xf32, #tpu.memory_space<vmem>>, vector<16x96xf32>
      tpu.vector_store %arg6[%c0_14, %c0_15], %15 {strides = array<i32>} : memref<16x96xf32, #tpu.memory_space<vmem>>, vector<16x96xf32>,
    } else {
    }
    return
  }
  func.func @transform_0(%arg0: i32, %arg1: i32, %arg2: i32) -> (i32, i32) {
    %c0_i32 = arith.constant 0 : i32
    return %arg0, %arg2 : i32, i32
  }
  func.func @transform_1(%arg0: i32, %arg1: i32, %arg2: i32) -> (i32, i32) {
    %c0_i32 = arith.constant 0 : i32
    return %arg2, %arg1 : i32, i32
  }
  func.func @transform_2(%arg0: i32, %arg1: i32, %arg2: i32) -> (i32, i32) {
    %c0_i32 = arith.constant 0 : i32
    %c0_i32_0 = arith.constant 0 : i32
    return %c0_i32, %arg1 : i32, i32
  }
  func.func @transform_3(%arg0: i32, %arg1: i32, %arg2: i32) -> (i32, i32) {
    %c0_i32 = arith.constant 0 : i32
    return %arg0, %arg1 : i32, i32
  }
}

</mosaic_0001>

<bundles_post_ra>
// kernel: tpu_custom_call.1
= control target key start
LH: loop header
LB: loop body
LE: loop exit
PB: predicated region body
PF: predicated region fallthrough
CT: control target
= control target key end

     0   :  { %8 = vsyncpa [#allocation4], 0  ;;  %s365_s0 = inlined_call_operand.hbm [shape: f32[16,32], index: 0, kind: input, shape index: {}]   ;;  %s366_s1 = inlined_call_operand.hbm [shape: f32[32,96], index: 1, kind: input, shape index: {}]   ;;  %s367_s2 = inlined_call_operand.vmem [shape: f32[1,96], index: 2, kind: input, shape index: {}]   ;;  %s368_s3 = inlined_call_operand.hbm [shape: f32[16,96], index: 3, kind: output, shape index: {}]  }
   0x1   :  { %9 = vsyncpa [#allocation7], 0 }
   0x2   :  { %10 = vsyncpa [#allocation5], 0  ;;  %s285_s12 = smov [#allocation3]   ;;  %s213_s16 = scalar_lea.hbm %s365_s0, 256 }
   0x3   :  { %s16_s13 = sshll.u32 %s285_s12, 4  ;;  %p214_p0 = scmp.ne.s32.totalorder %s365_s0, %s213_s16  ;;  %s17_s13 = int_to_ptr.vmem [resolvable:$true] %s16_s13 }
   0x4   :  { %p217_p1 = scmp.lt.u32.totalorder %s213_s16, %s365_s0 }
   0x6   :  { %p219_p2 = pnand %p217_p1, %p214_p0 }
   0x8   :  { %222 = shalt.err (!%p219_p2)
}
   0x9   :  { %s223_s21 = scalar_lea.vmem %s17_s13, 256  ;;  %p228_p4 = scmp.lt.s32.totalorder %s17_s13, %s17_s13 }
   0xa   :  { %p224_p3 = scmp.ne.s32.totalorder %s17_s13, %s223_s21  ;;  %p229_p5 = scmp.lt.s32.totalorder %s223_s21, %s223_s21 }
   0xc   :  { %p230_p6 = por %p229_p5, %p228_p4 }
   0xe   :  { %p231_p7 = pnand %p230_p6, %p224_p3 }
  0x10   :  { %234 = shalt.err (!%p231_p7)
}
  0x11   :  { %s286_s22 = smov 128   ;;  %s287_s23 = smov 8  }
  0x12   :  { %22 = dma.hbm_to_vmem [thread:$0]  %s365_s0, 256, %s17_s13, [#allocation4], %s286_s22, %s286_s22, %s287_s23  }
  0x13   :  { %s288_s26 = smov [#allocation6]   ;;  %s235_s30 = scalar_lea.hbm %s366_s1, 512 }
  0x14   :  { %s28_s27 = sshll.u32 %s288_s26, 4  ;;  %p236_p8 = scmp.ne.s32.totalorder %s366_s1, %s235_s30  ;;  %s29_s27 = int_to_ptr.vmem [resolvable:$true] %s28_s27 }
  0x15   :  { %p239_p9 = scmp.lt.u32.totalorder %s235_s30, %s366_s1 }
  0x17   :  { %p241_p10 = pnand %p239_p9, %p236_p8 }
  0x19   :  { %244 = shalt.err (!%p241_p10)
}
  0x1a   :  { %s245_s8 = scalar_lea.vmem %s29_s27, 512  ;;  %p250_p12 = scmp.lt.s32.totalorder %s29_s27, %s29_s27 }
  0x1b   :  { %p246_p11 = scmp.ne.s32.totalorder %s29_s27, %s245_s8  ;;  %p251_p13 = scmp.lt.s32.totalorder %s245_s8, %s245_s8 }
  0x1d   :  { %p252_p0 = por %p251_p13, %p250_p12 }
  0x1f   :  { %p253_p1 = pnand %p252_p0, %p246_p11 }
  0x21   :  { %256 = shalt.err (!%p253_p1)
}
  0x22   :  { %34 = dma.hbm_to_vmem [thread:$0]  %s366_s1, 512, %s29_s27, [#allocation7], %s286_s22, %s286_s22, %s287_s23  }
  0x23   :  { %279 = dma.done.wait [#allocation4], 256  }
  0x24   :  { %280 = vsyncadd [#allocation4], 4294967040 }
  0x25   :  { %281 = dma.done.wait [#allocation7], 512  }
  0x26   :  { %282 = vsyncadd [#allocation7], 4294966784  ;;  %vm47_vm0 = vcmask 785408   ;;  %v289_v0 = vmov 0.0   ;;  %vm58_vm1 = vcmask 261120   ;;  %v54_v1 = vld [vmem:[#allocation6] sm:$0xff] }
  0x27   :  { %49 = vst.msk [vmem:[#allocation2 + $0x8] sm:$0xff] %vm47_vm0, %v289_v0  ;;  %48 = vst.msk [vmem:[#allocation2] sm:$0xff] %vm47_vm0, %v289_v0  ;;  %v55_v2 = vld [vmem:[#allocation6 + $0x8] sm:$0xff]  ;;  %v56_v3 = vld [vmem:[#allocation6 + $0x10] sm:$0xff]  ;;  %s290_s11 = smov [#allocation8]  }
  0x28   :  { %v199_v4 = vpack.c.bf16 %v55_v2, %v54_v1  ;;  %v57_v5 = vld [vmem:[#allocation6 + $0x18] sm:$0xff]  ;;  %v52_v6 = vld [vmem:[#allocation3] sm:$0xff]  ;;  %v181_v15 = vld [vmem:[%s367_s2] ss:$0 sm:$0xff]  ;;  %s166_s12 = sshll.u32 %s290_s11, 4  ;;  %s167_s12 = int_to_ptr.vmem [resolvable:$true] %s166_s12 }
  0x29   :  { %v203_v7 = vpack.c.bf16 %v57_v5, %v56_v3  ;;  %196 = vmatprep.mubr.msk.f32.mxu0 %vm58_vm1, %v52_v6  ;;  %v53_v8 = vld [vmem:[#allocation3 + $0x8] sm:$0xff]  ;;  %s257_s13 = scalar_lea.vmem %s167_s12, 256  ;;  %p262_p3 = scmp.lt.s32.totalorder %s167_s12, %s167_s12 }
  0x2a   :  { %200 = vmatprep.subr.bf16.mxu0 %v199_v4  ;;  %p258_p2 = scmp.ne.s32.totalorder %s167_s12, %s257_s13  ;;  %p263_p4 = scmp.lt.s32.totalorder %s257_s13, %s257_s13 }
  0x2b   :  { %202 = vmatpush3.bf16.msra.mxu0 %v199_v4 }
  0x2c   :  { %204 = vmatprep.subr.bf16.mxu0 %v203_v7  ;;  %p264_p5 = por %p263_p4, %p262_p3 }
  0x2e   :  { %v51_v9 = vld [vmem:[#allocation2 + $0x8] sm:$0xff]  ;;  %v50_v10 = vld [vmem:[#allocation2] sm:$0xff]  ;;  %p265_p6 = pnand %p264_p5, %p258_p2 }
  0x2f   :  { %206 = vmatpush3.bf16.msra.mxu0 %v203_v7 }
  0x32   :  { %197 = vmatmul.mubr.msk.f32.vlgmr.msra.gmra.mrb[0].mxu0 %vm58_vm1, %v53_v8 }
 0x105   :  { %v198_v11 = vpop.f32.mrb[0].mxu0 }
 0x106   :  { %v141_v12 = vadd.f32 %v198_v11, %v51_v9  ;;  %v131_v13 = vpop.f32.mrb[1].mxu0 }
 0x107   :  { %v140_v14 = vadd.f32 %v131_v13, %v50_v10 }
 0x108   :  { %144 = vst.msk [vmem:[#allocation2 + $0x8] sm:$0xff] %vm47_vm0, %v141_v12 }
 0x109   :  { %143 = vst.msk [vmem:[#allocation2] sm:$0xff] %vm47_vm0, %v140_v14 }
 0x10f   :  { %v149_v16 = vld [vmem:[#allocation2 + $0x8] sm:$0xff] }
 0x110   :  { %v148_v17 = vld [vmem:[#allocation2] sm:$0xff]  ;;  %v158_v18 = vadd.f32 %v181_v15, %v149_v16 }
 0x111   :  { %v157_v19 = vadd.f32 %v181_v15, %v148_v17 }
 0x112   :  { %160 = vst.msk [vmem:[#allocation8 + $0x8] sm:$0xff] %vm47_vm0, %v158_v18 }
 0x113   :  { %159 = vst.msk [vmem:[#allocation8] sm:$0xff] %vm47_vm0, %v157_v19 }
 0x114   :  { %268 = shalt.err (!%p265_p6)
}
 0x115   :  { %s269_s15 = scalar_lea.hbm %s368_s3, 256 }
 0x116   :  { %p270_p7 = scmp.ne.s32.totalorder %s368_s3, %s269_s15  ;;  %p273_p8 = scmp.lt.u32.totalorder %s269_s15, %s368_s3 }
 0x118   :  { %p275_p9 = pnand %p273_p8, %p270_p7 }
 0x11a   :  { %278 = shalt.err (!%p275_p9)
}
 0x11b   :  { %172 = dma.vmem_to_hbm [thread:$0]  %s167_s12, 256, %s368_s3, [#allocation5], %s286_s22, %s286_s22, %s287_s23  }
 0x11c   :  { %283 = dma.done.wait [#allocation5], 256  }
 0x11d   :  { %284 = vsyncadd [#allocation5], 4294967040 }
 0x11e   :  { %176 = vsyncpa [#allocation4], 1 }
 0x11f   :  { %177 = vsyncpa [#allocation7], 1 }
 0x120   :  { %178 = vsyncpa [#allocation5], 1 }

</bundles_post_ra>
